<compile_context>
chip_gen: v5e
topology: v5e:2x2
jax: 0.10.0
libtpu: 0.0.40
codegen_flags: <defaults>
</compile_context>

<pallas_src>
import jax
import jax.numpy as jnp
from jax.experimental import pallas as pl
from jax.experimental.pallas import tpu as pltpu


def _outconv_kernel(w_ref, b_ref, x_ref, o_ref):
    # w_ref: SMEM (Cout, Cin) f32 scalar weights
    # b_ref: SMEM (Cout,)     f32 scalar bias
    # x_ref: VMEM (1, Cin, TS)   -- spatial on lanes
    # o_ref: VMEM (1, Cout, TS)  -- spatial on lanes
    cin = x_ref.shape[1]
    cout = o_ref.shape[1]

    # Load each input-channel row once as a lane-dense (1, TS) f32 vector.
    xs = [x_ref[0, ci:ci + 1, :].astype(jnp.float32) for ci in range(cin)]

    # Unrolled VPU FMAs over the tiny channel dimension (scalars from SMEM).
    for co in range(cout):
        acc = xs[0] * w_ref[co, 0]
        for ci in range(1, cin):
            acc = acc + xs[ci] * w_ref[co, ci]
        acc = acc + b_ref[co]
        o_ref[0, co:co + 1, :] = acc.astype(o_ref.dtype)


def _pick_spatial_tile(hw, max_tile):
    """Spatial tile: full extent if small, else a multiple-of-128 divisor."""
    if hw <= max_tile:
        return hw
    t = (max_tile // 128) * 128
    while t >= 128:
        if hw % t == 0:
            return t
        t -= 128
    return hw  # fallback: single full-extent block (always legal)


def outconv_1x1(x_nchw, weight, bias, *, max_tile_s=2048):
    """1x1 convolution (nn.Conv2d(in_ch, out_ch, kernel_size=1)), NCHW in/out.

    Args:
      x_nchw: (N, Cin, H, W) input, PyTorch NCHW convention.
      weight: (Cout, Cin, 1, 1) conv weight (PyTorch layout).
      bias:   (Cout,) conv bias.
    Returns:
      (N, Cout, H, W) output, NCHW.
    """
    N, Cin, H, W = x_nchw.shape
    Cout = weight.shape[0]
    HW = H * W

    x3 = x_nchw.reshape(N, Cin, HW)                    # free reshape of NCHW
    w2 = weight.reshape(Cout, Cin).astype(jnp.float32)  # scalars for SMEM
    b1 = bias.reshape(Cout).astype(jnp.float32)

    tile_s = _pick_spatial_tile(HW, max_tile_s)
    grid = (N, HW // tile_s)

    out3 = pl.pallas_call(
        _outconv_kernel,
        out_shape=jax.ShapeDtypeStruct((N, Cout, HW), x_nchw.dtype),
        grid_spec=pltpu.PrefetchScalarGridSpec(
            num_scalar_prefetch=0,
            grid=grid,
            in_specs=[
                pl.BlockSpec(memory_space=pltpu.MemorySpace.SMEM),  # weights
                pl.BlockSpec(memory_space=pltpu.MemorySpace.SMEM),  # bias
                pl.BlockSpec((1, Cin, tile_s), lambda n, s: (n, 0, s)),
            ],
            out_specs=pl.BlockSpec((1, Cout, tile_s), lambda n, s: (n, 0, s)),
        ),
        compiler_params=pltpu.CompilerParams(
            dimension_semantics=("parallel", "parallel")),
    )(w2, b1, x3)

    # (N, Cout, H*W) -> (N, Cout, H, W): free reshape, already NCHW order.
    return out3.reshape(N, Cout, H, W)


if __name__ == "__main__":
    # Small shapes consistent with the module: batch=2, in_channels=4,
    # out_channels=3, spatial=16x16.
    N, Cin, Cout, Hs, Ws = 2, 4, 3, 16, 16

    key = jax.random.PRNGKey(0)
    kx, kw, kb = jax.random.split(key, 3)

    x = jax.random.normal(kx, (N, Cin, Hs, Ws), dtype=jnp.float32)
    weight = jax.random.normal(kw, (Cout, Cin, 1, 1), dtype=jnp.float32) * 0.1
    bias = jax.random.normal(kb, (Cout,), dtype=jnp.float32) * 0.1

    y = jax.block_until_ready(outconv_1x1(x, weight, bias))

    # Reference check against plain JAX (same math as PyTorch 1x1 conv).
    y_ref = jnp.einsum("nchw,oc->nohw", x, weight.reshape(Cout, Cin)) \
            + bias.reshape(1, Cout, 1, 1)
    assert y.shape == (N, Cout, Hs, Ws)
    assert jnp.allclose(y, y_ref, atol=1e-5, rtol=1e-5)

    print("KERNEL_OK")
</pallas_src>

<mosaic_0001>
module attributes {stable_mosaic.version = 11 : i64} {
  func.func @_outconv_kernel(%arg0: i32, %arg1: i32, %arg2: memref<3x4xf32, #tpu.memory_space<smem>>, %arg3: memref<3xf32, #tpu.memory_space<smem>>, %arg4: memref<1x4x256xf32, #tpu.memory_space<vmem>>, %arg5: memref<1x3x256xf32, #tpu.memory_space<vmem>>) attributes {dimension_semantics = [#tpu.dimension_semantics<parallel>, #tpu.dimension_semantics<parallel>], iteration_bounds = array<i64: 2, 1>, scalar_prefetch = 0 : i64, scratch_operands = 0 : i64, tpu.core_type = #tpu.core_type<tc>, window_params = [{transform_indices = @transform_0, window_bounds = array<i64: 3, 4>}, {transform_indices = @transform_1, window_bounds = array<i64: 3>}, {transform_indices = @transform_2, window_bounds = array<i64: 1, 4, 256>}, {transform_indices = @transform_3, window_bounds = array<i64: 1, 3, 256>}]} {
    %c0 = arith.constant 0 : index
    %c0_0 = arith.constant 0 : index
    %c0_1 = arith.constant 0 : index
    %0 = vector.load %arg4[%c0, %c0_0, %c0_1] : memref<1x4x256xf32, #tpu.memory_space<vmem>>, vector<1x1x256xf32>
    %1 = vector.shape_cast %0 : vector<1x1x256xf32> to vector<1x256xf32>
    %c0_2 = arith.constant 0 : index
    %c1 = arith.constant 1 : index
    %c0_3 = arith.constant 0 : index
    %2 = vector.load %arg4[%c0_2, %c1, %c0_3] : memref<1x4x256xf32, #tpu.memory_space<vmem>>, vector<1x1x256xf32>
    %3 = vector.shape_cast %2 : vector<1x1x256xf32> to vector<1x256xf32>
    %c0_4 = arith.constant 0 : index
    %c2 = arith.constant 2 : index
    %c0_5 = arith.constant 0 : index
    %4 = vector.load %arg4[%c0_4, %c2, %c0_5] : memref<1x4x256xf32, #tpu.memory_space<vmem>>, vector<1x1x256xf32>
    %5 = vector.shape_cast %4 : vector<1x1x256xf32> to vector<1x256xf32>
    %c0_6 = arith.constant 0 : index
    %c3 = arith.constant 3 : index
    %c0_7 = arith.constant 0 : index
    %6 = vector.load %arg4[%c0_6, %c3, %c0_7] : memref<1x4x256xf32, #tpu.memory_space<vmem>>, vector<1x1x256xf32>
    %7 = vector.shape_cast %6 : vector<1x1x256xf32> to vector<1x256xf32>
    %c0_8 = arith.constant 0 : index
    %c0_9 = arith.constant 0 : index
    %8 = memref.load %arg2[%c0_8, %c0_9] : memref<3x4xf32, #tpu.memory_space<smem>>
    %9 = vector.broadcast %8 : f32 to vector<1x256xf32>
    %10 = arith.mulf %1, %9 : vector<1x256xf32>
    %c0_10 = arith.constant 0 : index
    %c1_11 = arith.constant 1 : index
    %11 = memref.load %arg2[%c0_10, %c1_11] : memref<3x4xf32, #tpu.memory_space<smem>>
    %12 = vector.broadcast %11 : f32 to vector<1x256xf32>
    %13 = arith.mulf %3, %12 : vector<1x256xf32>
    %14 = arith.addf %10, %13 : vector<1x256xf32>
    %c0_12 = arith.constant 0 : index
    %c2_13 = arith.constant 2 : index
    %15 = memref.load %arg2[%c0_12, %c2_13] : memref<3x4xf32, #tpu.memory_space<smem>>
    %16 = vector.broadcast %15 : f32 to vector<1x256xf32>
    %17 = arith.mulf %5, %16 : vector<1x256xf32>
    %18 = arith.addf %14, %17 : vector<1x256xf32>
    %c0_14 = arith.constant 0 : index
    %c3_15 = arith.constant 3 : index
    %19 = memref.load %arg2[%c0_14, %c3_15] : memref<3x4xf32, #tpu.memory_space<smem>>
    %20 = vector.broadcast %19 : f32 to vector<1x256xf32>
    %21 = arith.mulf %7, %20 : vector<1x256xf32>
    %22 = arith.addf %18, %21 : vector<1x256xf32>
    %c0_16 = arith.constant 0 : index
    %23 = memref.load %arg3[%c0_16] : memref<3xf32, #tpu.memory_space<smem>>
    %24 = vector.broadcast %23 : f32 to vector<1x256xf32>
    %25 = arith.addf %22, %24 : vector<1x256xf32>
    %c0_17 = arith.constant 0 : index
    %c0_18 = arith.constant 0 : index
    %c0_19 = arith.constant 0 : index
    %26 = vector.load %arg5[%c0_17, %c0_18, %c0_19] : memref<1x3x256xf32, #tpu.memory_space<vmem>>, vector<1x1x256xf32>
    %27 = vector.shape_cast %26 : vector<1x1x256xf32> to vector<1x256xf32>
    %28 = vector.shape_cast %25 : vector<1x256xf32> to vector<1x1x256xf32>
    tpu.vector_store %arg5[%c0_17, %c0_18, %c0_19], %28 {strides = array<i32>} : memref<1x3x256xf32, #tpu.memory_space<vmem>>, vector<1x1x256xf32>,
    %c1_20 = arith.constant 1 : index
    %c0_21 = arith.constant 0 : index
    %29 = memref.load %arg2[%c1_20, %c0_21] : memref<3x4xf32, #tpu.memory_space<smem>>
    %30 = vector.broadcast %29 : f32 to vector<1x256xf32>
    %31 = arith.mulf %1, %30 : vector<1x256xf32>
    %c1_22 = arith.constant 1 : index
    %c1_23 = arith.constant 1 : index
    %32 = memref.load %arg2[%c1_22, %c1_23] : memref<3x4xf32, #tpu.memory_space<smem>>
    %33 = vector.broadcast %32 : f32 to vector<1x256xf32>
    %34 = arith.mulf %3, %33 : vector<1x256xf32>
    %35 = arith.addf %31, %34 : vector<1x256xf32>
    %c1_24 = arith.constant 1 : index
    %c2_25 = arith.constant 2 : index
    %36 = memref.load %arg2[%c1_24, %c2_25] : memref<3x4xf32, #tpu.memory_space<smem>>
    %37 = vector.broadcast %36 : f32 to vector<1x256xf32>
    %38 = arith.mulf %5, %37 : vector<1x256xf32>
    %39 = arith.addf %35, %38 : vector<1x256xf32>
    %c1_26 = arith.constant 1 : index
    %c3_27 = arith.constant 3 : index
    %40 = memref.load %arg2[%c1_26, %c3_27] : memref<3x4xf32, #tpu.memory_space<smem>>
    %41 = vector.broadcast %40 : f32 to vector<1x256xf32>
    %42 = arith.mulf %7, %41 : vector<1x256xf32>
    %43 = arith.addf %39, %42 : vector<1x256xf32>
    %c1_28 = arith.constant 1 : index
    %44 = memref.load %arg3[%c1_28] : memref<3xf32, #tpu.memory_space<smem>>
    %45 = vector.broadcast %44 : f32 to vector<1x256xf32>
    %46 = arith.addf %43, %45 : vector<1x256xf32>
    %c0_29 = arith.constant 0 : index
    %c1_30 = arith.constant 1 : index
    %c0_31 = arith.constant 0 : index
    %47 = vector.load %arg5[%c0_29, %c1_30, %c0_31] : memref<1x3x256xf32, #tpu.memory_space<vmem>>, vector<1x1x256xf32>
    %48 = vector.shape_cast %47 : vector<1x1x256xf32> to vector<1x256xf32>
    %49 = vector.shape_cast %46 : vector<1x256xf32> to vector<1x1x256xf32>
    tpu.vector_store %arg5[%c0_29, %c1_30, %c0_31], %49 {strides = array<i32>} : memref<1x3x256xf32, #tpu.memory_space<vmem>>, vector<1x1x256xf32>,
    %c2_32 = arith.constant 2 : index
    %c0_33 = arith.constant 0 : index
    %50 = memref.load %arg2[%c2_32, %c0_33] : memref<3x4xf32, #tpu.memory_space<smem>>
    %51 = vector.broadcast %50 : f32 to vector<1x256xf32>
    %52 = arith.mulf %1, %51 : vector<1x256xf32>
    %c2_34 = arith.constant 2 : index
    %c1_35 = arith.constant 1 : index
    %53 = memref.load %arg2[%c2_34, %c1_35] : memref<3x4xf32, #tpu.memory_space<smem>>
    %54 = vector.broadcast %53 : f32 to vector<1x256xf32>
    %55 = arith.mulf %3, %54 : vector<1x256xf32>
    %56 = arith.addf %52, %55 : vector<1x256xf32>
    %c2_36 = arith.constant 2 : index
    %c2_37 = arith.constant 2 : index
    %57 = memref.load %arg2[%c2_36, %c2_37] : memref<3x4xf32, #tpu.memory_space<smem>>
    %58 = vector.broadcast %57 : f32 to vector<1x256xf32>
    %59 = arith.mulf %5, %58 : vector<1x256xf32>
    %60 = arith.addf %56, %59 : vector<1x256xf32>
    %c2_38 = arith.constant 2 : index
    %c3_39 = arith.constant 3 : index
    %61 = memref.load %arg2[%c2_38, %c3_39] : memref<3x4xf32, #tpu.memory_space<smem>>
    %62 = vector.broadcast %61 : f32 to vector<1x256xf32>
    %63 = arith.mulf %7, %62 : vector<1x256xf32>
    %64 = arith.addf %60, %63 : vector<1x256xf32>
    %c2_40 = arith.constant 2 : index
    %65 = memref.load %arg3[%c2_40] : memref<3xf32, #tpu.memory_space<smem>>
    %66 = vector.broadcast %65 : f32 to vector<1x256xf32>
    %67 = arith.addf %64, %66 : vector<1x256xf32>
    %c0_41 = arith.constant 0 : index
    %c2_42 = arith.constant 2 : index
    %c0_43 = arith.constant 0 : index
    %68 = vector.load %arg5[%c0_41, %c2_42, %c0_43] : memref<1x3x256xf32, #tpu.memory_space<vmem>>, vector<1x1x256xf32>
    %69 = vector.shape_cast %68 : vector<1x1x256xf32> to vector<1x256xf32>
    %70 = vector.shape_cast %67 : vector<1x256xf32> to vector<1x1x256xf32>
    tpu.vector_store %arg5[%c0_41, %c2_42, %c0_43], %70 {strides = array<i32>} : memref<1x3x256xf32, #tpu.memory_space<vmem>>, vector<1x1x256xf32>,
    return
  }
  func.func @transform_0(%arg0: i32, %arg1: i32) -> (i32, i32) {
    %c0_i32 = arith.constant 0 : i32
    %c0_i32_0 = arith.constant 0 : i32
    %c0_i32_1 = arith.constant 0 : i32
    return %c0_i32, %c0_i32_0 : i32, i32
  }
  func.func @transform_1(%arg0: i32, %arg1: i32) -> i32 {
    %c0_i32 = arith.constant 0 : i32
    %c0_i32_0 = arith.constant 0 : i32
    return %c0_i32 : i32
  }
  func.func @transform_2(%arg0: i32, %arg1: i32) -> (i32, i32, i32) {
    %c0_i32 = arith.constant 0 : i32
    %c0_i32_0 = arith.constant 0 : i32
    return %arg0, %c0_i32, %arg1 : i32, i32, i32
  }
  func.func @transform_3(%arg0: i32, %arg1: i32) -> (i32, i32, i32) {
    %c0_i32 = arith.constant 0 : i32
    %c0_i32_0 = arith.constant 0 : i32
    return %arg0, %c0_i32, %arg1 : i32, i32, i32
  }
}

</mosaic_0001>

<bundles_post_ra>
// kernel: tpu_custom_call.1
= control target key start
LH: loop header
LB: loop body
LE: loop exit
PB: predicated region body
PF: predicated region fallthrough
CT: control target
= control target key end

     0   :  { %8 = vsyncpa [#allocation4], 0  ;;  %s827_s0 = inlined_call_operand.hbm [shape: f32[3,4], index: 0, kind: input, shape index: {}]   ;;  %s828_s1 = inlined_call_operand.hbm [shape: f32[3], index: 1, kind: input, shape index: {}]   ;;  %s829_s2 = inlined_call_operand.hbm [shape: f32[2,4,256], index: 2, kind: input, shape index: {}]   ;;  %s830_s3 = inlined_call_operand.vmem [shape: f32[2,3,256], index: 3, kind: output, shape index: {}]  }
   0x1   :  { %9 = vsyncpa [#allocation6], 0 }
   0x2   :  { %10 = vsyncpa [#allocation3], 0 }
   0x3   :  { %12 = vsyncpa [#allocation3 + $0x1], 0  ;;  %s688_s12 = smov 0   ;;  %s690_s13 = smov 0  }
   0x4   :  { %s692_s14 = smov 0   ;;  %s694_s15 = smov 0  }
   0x5   :  { %s696_s16 = smov 0   ;;  %s698_s17 = smov 0  }
   0x6 LB: > { %s433_s18 = sadd.s32 4294967295, %s664_s17   ;;  %p94_p0 = scmp.ne.s32.totalorder %s648_s13, %s644_s12  ;;  %s664_s17 = sphi %s698_s17, %s18_s17   ;;  %s660_s16 = sphi %s696_s16, %s841_s16   ;;  %s656_s15 = sphi %s694_s15, %s840_s15   ;;  %s652_s14 = sphi %s692_s14, %s839_s14   ;;  %s648_s13 = sphi %s690_s13, %s838_s13   ;;  %s644_s12 = sphi %s688_s12, %s837_s12  }
   0x7   : > { %p718_p1 = scmp.eq.s32.totalorder %s433_s18, 0  ;;  %p435_p2 = scmp.ge.s32.totalorder %s664_s17, 1 }
   0x8   : > { %p133_p3 = scmp.lt.s32.totalorder %s664_s17, 3  ;;  %s145_s23 = sshll.u32 %s827_s0, 4  ;;  %s146_s23 = int_to_ptr.hbm [resolvable:$true] %s145_s23 }
   0x9   : > { %p726_p4 = por %p718_p1, %p94_p0  ;;  %s155_s27 = sshll.u32 %s828_s1, 4  ;;  %s156_s27 = int_to_ptr.hbm [resolvable:$true] %s155_s27 }
   0xa   : > { %p733_p5 = pnand %p435_p2, %p133_p3  ;;  %s666_s28 = smov [#allocation2]  }
   0xb   : > { %s667_s29 = smov [#allocation5]   ;;  %s30_s30 = sadd.s32 1, %s660_s16 }
   0xc   : > { %p480_p6 = pneg %p733_p5  ;;  %s81_s4 = sadd.s32 1, %s652_s14 }
   0xd   : > { %p32_p8 = scmp.ge.s32.totalorder %s30_s30, 2  ;;  %p88_p9 = scmp.ne.s32.totalorder %s652_s14, %s648_s13 }
   0xe   : > { %p481_p7 = pnand %p480_p6, %p718_p1  ;;  %p89_p10 = scmp.eq.s32.totalorder %s664_s17, 0 }
   0xf   : > { %p493_p11 = scmp.lt.s32.totalorder %s664_s17, 2  ;;  %s843_s30 = smov (%p32_p8, %s30_s30), 0 }
  0x10   : > { %483 = dma.hbm_to_smem (!%p481_p7), %s146_s23, 64, %s666_s28, [#allocation4]  }
  0x11   : > { %486 = dma.hbm_to_smem (!%p481_p7), %s156_s27, 16, %s667_s29, [#allocation6]  }
  0x12   : > { %p752_p12 = por %p89_p10, %p88_p9  ;;  %s166_s6 = sand.u32 1, %s652_s14  }
  0x13   : > { %s76_s7 = ssub.s32 %s660_s16, %s843_s30  ;;  %s439_s8 = sshll.u32 %s166_s6, 3 }
  0x14   : > { %p79_p13 = scmp.eq.s32.totalorder %s76_s7, 0  ;;  %s468_s9 = sshll.u32 %s660_s16, 3 }
  0x15   : > { %s177_s18 = scalar_lea.hbm %s829_s2, %s468_s9  ;;  %s170_s21 = scalar_lea.vmem [#allocation7], %s439_s8 }
  0x16   : > { %s761_s10 = scalar_select %p79_p13, %s652_s14, %s81_s4  }
  0x17   : > { %s181_s22 = sshll.u32 %s170_s21, 4  ;;  %s179_s23 = sshll.u32 %s177_s18, 4  ;;  %s182_s22 = int_to_ptr.vmem [resolvable:$true] %s181_s22  ;;  %s180_s23 = int_to_ptr.hbm [resolvable:$true] %s179_s23 }
  0x18   : > { %p488_p0 = pnand %p493_p11, %p752_p12  ;;  %s167_s25 = scalar_lea.sflag [#allocation3], %s166_s6 }
  0x19   : > { %190 = sbr.rel (%p733_p5) target bundleno = 68 (0x44), region = 32 }
  0x1a   : > { %490 = dma.hbm_to_vmem [thread:$0]  (!%p488_p0), %s180_s23, 128, %s182_s22, %s167_s25  }
  0x1e   : > { %631 = dma.done.wait (%p718_p1), [#allocation4], 64  }
  0x1f   : > { %633 = vsyncadd (%p718_p1), [#allocation4], 4294967232 }
  0x20   : > { %635 = dma.done.wait (%p718_p1), [#allocation6], 16  }
  0x21   : > { %637 = vsyncadd (%p718_p1), [#allocation6], 4294967280  ;;  %s202_s26 = sand.u32 1, %s648_s13  }
  0x22   : > { %s445_s27 = sshll.u32 %s202_s26, 3  ;;  %s203_s28 = scalar_lea.sflag [#allocation3], %s202_s26 }
  0x23   : > { %s206_s29 = scalar_lea.vmem [#allocation7], %s445_s27 }
  0x24   : > { %639 = dma.done.wait (%p726_p4), %s203_s28, 128  }
  0x25   : > { %641 = vsyncadd (%p726_p4), %s203_s28, 4294967168 }
  0x26   : > { %212 = sfence }
  0x27   : > { %p237_p2 = scmp.lt.s32.totalorder %s656_s15, 1  ;;  %s253_s24 = sld [smem:[#allocation2]]  ;;  %v246_v0 = vld [vmem:[%s206_s29] ss:$4 sm:$0x3]  ;;  %v271_v13 = vlaneseq }
  0x28   : > { %s451_s19 = sld [smem:[#allocation2 + $0x1]]  ;;  %v448_v2 = vld [vmem:[%s206_s29 + $0x1] ss:$4 sm:$0x3] }
  0x29   : > { %s845_s15 = smov (!%p237_p2, %s656_s15), 1  ;;  %s452_s4 = sld [smem:[#allocation2 + $0x2]]  ;;  %v449_v3 = vld [vmem:[%s206_s29 + $0x2] ss:$4 sm:$0x3]  ;;  %vm798_vm0 = vcmp.lt.s32.totalorder %v271_v13, 256 }
  0x2a   : > { %s453_s5 = sld [smem:[#allocation2 + $0x3]]  ;;  %v450_v5 = vld [vmem:[%s206_s29 + $0x3] ss:$4 sm:$0x3]  ;;  %s469_s21 = sshll.u32 %s845_s15, 3 }
  0x2b   : > { %s789_s6 = sld [smem:[#allocation5]]  ;;  %s244_s27 = scalar_lea.vmem %s830_s3, %s469_s21 }
  0x2c   : > { %s454_s7 = sld [smem:[#allocation2 + $0x80]] }
  0x2d   : > { %v254_v1 = vstv %s253_s24  ;;  %s455_s20 = sld [smem:[#allocation2 + $0x81]] }
  0x2e   : > { %v255_v4 = vmul.f32 %v254_v1, %v246_v0  ;;  %v257_v6 = vstv %s451_s19  ;;  %s456_s8 = sld [smem:[#allocation2 + $0x82]] }
  0x2f   : > { %v258_v7 = vmul.f32 %v448_v2, %v257_v6  ;;  %v261_v8 = vstv %s452_s4  ;;  %s457_s9 = sld [smem:[#allocation2 + $0x83]] }
  0x30   : > { %v262_v9 = vmul.f32 %v449_v3, %v261_v8  ;;  %v265_v10 = vstv %s453_s5  ;;  %s791_s11 = sld [smem:[#allocation5 + $0x1]] }
  0x31   : > { %v259_v11 = vadd.f32 %v258_v7, %v255_v4  ;;  %v266_v12 = vmul.f32 %v450_v5, %v265_v10  ;;  %s460_s12 = sld [smem:[#allocation2 + $0x100]]  ;;  %v269_v18 = vstv %s789_s6 }
  0x32   : > { %v277_v14 = vstv %s454_s7  ;;  %s461_s18 = sld [smem:[#allocation2 + $0x101]] }
  0x33   : > { %v263_v15 = vadd.f32 %v262_v9, %v259_v11  ;;  %v278_v16 = vmul.f32 %v277_v14, %v246_v0  ;;  %v280_v17 = vstv %s455_s20  ;;  %s462_s22 = sld [smem:[#allocation2 + $0x102]] }
  0x34   : > { %v281_v19 = vmul.f32 %v448_v2, %v280_v17  ;;  %v284_v20 = vstv %s456_s8  ;;  %s463_s23 = sld [smem:[#allocation2 + $0x103]] }
  0x35   : > { %v267_v21 = vadd.f32 %v266_v12, %v263_v15  ;;  %v285_v22 = vmul.f32 %v449_v3, %v284_v20  ;;  %v288_v23 = vstv %s457_s9  ;;  %s464_s15 = sld [smem:[#allocation5 + $0x2]] }
  0x36   : > { %v282_v25 = vadd.f32 %v281_v19, %v278_v16  ;;  %v289_v26 = vmul.f32 %v450_v5, %v288_v23  ;;  %v292_v32 = vstv %s791_s11 }
  0x37   : > { %v270_v27 = vadd.f32 %v269_v18, %v267_v21  ;;  %v297_v28 = vstv %s460_s12 }
  0x38   : > { %v286_v29 = vadd.f32 %v285_v22, %v282_v25  ;;  %v298_v30 = vmul.f32 %v297_v28, %v246_v0  ;;  %v300_v31 = vstv %s461_s18 }
  0x39   : > { %275 = vst.msk [vmem:[%s244_s27] ss:$4 sm:$0x3] %vm798_vm0, %v270_v27  ;;  %v301_v33 = vmul.f32 %v448_v2, %v300_v31  ;;  %v304_v34 = vstv %s462_s22 }
  0x3a   : > { %v290_v35 = vadd.f32 %v289_v26, %v286_v29  ;;  %v305_v36 = vmul.f32 %v449_v3, %v304_v34  ;;  %v308_v37 = vstv %s463_s23 }
  0x3b   : > { %v302_v38 = vadd.f32 %v301_v33, %v298_v30  ;;  %v309_v39 = vmul.f32 %v450_v5, %v308_v37  ;;  %v312_v42 = vstv %s464_s15 }
  0x3c   : > { %v293_v40 = vadd.f32 %v292_v32, %v290_v35 }
  0x3d   : > { %v306_v41 = vadd.f32 %v305_v36, %v302_v38 }
  0x3e   : > { %459 = vst.msk [vmem:[%s244_s27 + $0x1] ss:$4 sm:$0x3] %vm798_vm0, %v293_v40 }
  0x3f   : > { %v310_v43 = vadd.f32 %v309_v39, %v306_v41 }
  0x41   : > { %v313_v44 = vadd.f32 %v312_v42, %v310_v43 }
  0x43   : > { %465 = vst.msk [vmem:[%s244_s27 + $0x2] ss:$4 sm:$0x3] %vm798_vm0, %v313_v44 }
  0x44 PF: > { %s18_s17 = sadd.s32 1, %s664_s17   ;;  %s837_s12 = smov %s648_s13 }
  0x45   : > { %p15_p1 = scmp.ge.s32.totalorder %s18_s17, 4   ;;  %s838_s13 = smov %s652_s14 }
  0x46   : > { %s839_s14 = smov %s761_s10  ;;  %s840_s15 = smov %s660_s16 }
  0x47   : > { %s841_s16 = smov %s843_s30  ;;  %17 = sbr.rel (!%p15_p1) target bundleno = 6 (0x6), region = 86 }
  0x4c   :  { %346 = vsyncpa [#allocation3], 1 }
  0x4d   :  { %348 = vsyncpa [#allocation3 + $0x1], 1 }
  0x4e   :  { %349 = vsyncpa [#allocation4], 1 }
  0x4f   :  { %351 = vsyncpa [#allocation4 + $0x1], 1 }
  0x50   :  { %352 = vsyncpa [#allocation6], 1 }

</bundles_post_ra>
